<compile_context>
chip_gen: v5e
topology: v5e:2x2
jax: 0.10.0
libtpu: 0.0.40
codegen_flags: <defaults>
</compile_context>

<pallas_src>
import functools

import jax
import jax.numpy as jnp
from jax.experimental import pallas as pl
from jax.experimental.pallas import tpu as pltpu


def _round_up(x, m):
    return ((x + m - 1) // m) * m


# ----------------------------- Pallas kernel --------------------------------
def _patch_embed_kernel(p_ref, w_ref, b_ref, o_ref):
    # p_ref: (TM, Kp) bf16, w_ref: (Kp, Ep) bf16, b_ref: (1, Ep) f32,
    # o_ref: (TM, Ep) f32.  MXU matmul with f32 accumulation + f32 bias add.
    acc = jnp.dot(p_ref[...], w_ref[...], preferred_element_type=jnp.float32)
    o_ref[...] = (acc + b_ref[...]).astype(o_ref.dtype)


def _patch_embed_matmul(patches, weight, bias, *, tile_m):
    Mp, Kp = patches.shape
    _, Ep = weight.shape
    grid = (Mp // tile_m,)

    cost = pl.CostEstimate(
        flops=2 * Mp * Kp * Ep,
        transcendentals=0,
        bytes_accessed=(patches.size * patches.dtype.itemsize
                        + weight.size * weight.dtype.itemsize
                        + bias.size * bias.dtype.itemsize
                        + Mp * Ep * 4))

    return pl.pallas_call(
        _patch_embed_kernel,
        out_shape=jax.ShapeDtypeStruct((Mp, Ep), jnp.float32),
        grid_spec=pltpu.PrefetchScalarGridSpec(
            num_scalar_prefetch=0,
            grid=grid,
            in_specs=[
                pl.BlockSpec((tile_m, Kp), lambda i: (i, 0)),
                # Weight / bias blocks never change across the grid -> Pallas
                # keeps them resident in VMEM (no re-DMA per tile).
                pl.BlockSpec((Kp, Ep), lambda i: (0, 0)),
                pl.BlockSpec((1, Ep), lambda i: (0, 0)),
            ],
            out_specs=pl.BlockSpec((tile_m, Ep), lambda i: (i, 0)),
        ),
        compiler_params=pltpu.CompilerParams(
            dimension_semantics=("parallel",)),
        cost_estimate=cost,
    )(patches, weight, bias)


# ------------------------------ glue (JAX) -----------------------------------
def _extract_patches(x, patch_size, stride):
    """x: (B, C, H, W) -> (B*h_out*w_out, C*ph*pw).

    Rows ordered (b, patch-row, patch-col) == flatten(2).transpose(1, 2);
    columns ordered (c, ph, pw) == Conv2d weight (E, C, ph, pw) reshape.
    """
    B, C, H, W = x.shape
    ph, pw = patch_size
    sh, sw = stride
    h_out = (H - ph) // sh + 1
    w_out = (W - pw) // sw + 1
    if (sh, sw) == (ph, pw) and H % ph == 0 and W % pw == 0:
        # Non-overlapping patches: pure reshape/transpose, no im2col blow-up.
        p = x.reshape(B, C, h_out, ph, w_out, pw)
        p = p.transpose(0, 2, 4, 1, 3, 5)          # (B, h_out, w_out, C, ph, pw)
        patches = p.reshape(B * h_out * w_out, C * ph * pw)
    else:
        # TODO(synk): overlapping-stride path still materializes im2col in HBM.
        cols = []
        for c in range(C):
            for di in range(ph):
                for dj in range(pw):
                    sl = x[:, c,
                           di:di + sh * (h_out - 1) + 1:sh,
                           dj:dj + sw * (w_out - 1) + 1:sw]
                    cols.append(sl)
        patches = jnp.stack(cols, axis=-1).reshape(
            B * h_out * w_out, C * ph * pw)
    return patches, h_out, w_out


class PatchEmbedNew:
    """JAX/Pallas equivalent of PatchEmbed_new (Conv2d proj + flatten/transpose)."""

    def __init__(self, img_size, patch_size, in_chans, embed_dim, stride, key):
        self.img_size = img_size
        self.patch_size = patch_size
        self.stride = stride
        self.in_chans = in_chans
        self.embed_dim = embed_dim
        ph, pw = patch_size
        sh, sw = stride
        self.patch_hw = ((img_size[0] - ph) // sh + 1,
                         (img_size[1] - pw) // sw + 1)
        self.num_patches = self.patch_hw[0] * self.patch_hw[1]

        # Deterministic parameter init (mimics Conv2d weight/bias shapes).
        kw, kb = jax.random.split(key)
        K = in_chans * ph * pw
        bound = 1.0 / jnp.sqrt(K)
        # Conv2d weight: (E, C, ph, pw), bias: (E,)
        self.w_conv = jax.random.uniform(
            kw, (embed_dim, in_chans, ph, pw), jnp.float32, -bound, bound)
        self.b_conv = jax.random.uniform(
            kb, (embed_dim,), jnp.float32, -bound, bound)

        # Precompute the matmul-ready parameters ONCE (lane-aligned, bf16 weight).
        self._K = K
        self._Kp = _round_up(K, 128)
        self._Ep = _round_up(embed_dim, 128)
        w_mat = self.w_conv.reshape(embed_dim, K).T          # (K, E), K = (c, ph, pw)
        w_mat = jnp.pad(w_mat, ((0, self._Kp - K), (0, self._Ep - embed_dim)))
        self._w_mat = w_mat.astype(jnp.bfloat16)
        self._b_mat = jnp.pad(self.b_conv,
                              (0, self._Ep - embed_dim)).reshape(1, self._Ep)

    @functools.partial(jax.jit, static_argnums=0)
    def __call__(self, x):
        B = x.shape[0]
        # Cast early: the extraction copy then moves bf16 (half the HBM bytes).
        patches, h_out, w_out = _extract_patches(
            x.astype(jnp.bfloat16), self.patch_size, self.stride)
        M, K = patches.shape
        E = self.embed_dim
        Kp, Ep = self._Kp, self._Ep

        # Large fixed row tile (fewer grid steps); pad M up to a multiple of it.
        tile_m = min(512, _round_up(M, 8))
        Mp = _round_up(M, tile_m)
        patches = jnp.pad(patches, ((0, Mp - M), (0, Kp - K)))

        out = _patch_embed_matmul(patches, self._w_mat, self._b_mat,
                                  tile_m=tile_m)
        out = out[:M, :E]
        # (B*h*w, E) -> (B, h*w, E)  == conv(x).flatten(2).transpose(1, 2)
        return out.reshape(B, h_out * w_out, E)


# ------------------------------- reference -----------------------------------
def _reference(x, w_conv, b_conv, stride):
    # Same precision recipe as the kernel: bf16 operands, f32 accumulation.
    y = jax.lax.conv_general_dilated(
        x.astype(jnp.bfloat16), w_conv.astype(jnp.bfloat16),
        window_strides=stride, padding="VALID",
        dimension_numbers=("NCHW", "OIHW", "NCHW"),
        preferred_element_type=jnp.float32)
    y = y + b_conv.reshape(1, -1, 1, 1)
    B, E, h, w = y.shape
    return y.reshape(B, E, h * w).transpose(0, 2, 1)


if __name__ == "__main__":
    key = jax.random.PRNGKey(0)
    k_param, k_param2, k_x, k_x2 = jax.random.split(key, 4)

    # --- case 1: non-overlapping stride (stride == patch_size), fast path ----
    B, C, H, W = 2, 1, 64, 16
    patch_size = (8, 8)
    stride = (8, 8)
    embed_dim = 128

    module = PatchEmbedNew(img_size=(H, W), patch_size=patch_size,
                           in_chans=C, embed_dim=embed_dim, stride=stride,
                           key=k_param)
    x = jax.random.normal(k_x, (B, C, H, W), dtype=jnp.float32)
    out = jax.block_until_ready(module(x))
    ref = _reference(x, module.w_conv, module.b_conv, stride)
    assert out.shape == (B, module.num_patches, embed_dim), out.shape
    assert jnp.allclose(out, ref, atol=2e-2, rtol=2e-2), "mismatch (non-overlap)"

    # --- case 2: overlapping stride (like the module's default stride=10) ----
    B2, C2, H2, W2 = 2, 1, 32, 16
    patch_size2 = (8, 8)
    stride2 = (4, 4)
    module2 = PatchEmbedNew(img_size=(H2, W2), patch_size=patch_size2,
                            in_chans=C2, embed_dim=embed_dim, stride=stride2,
                            key=k_param2)
    x2 = jax.random.normal(k_x2, (B2, C2, H2, W2), dtype=jnp.float32)
    out2 = jax.block_until_ready(module2(x2))
    ref2 = _reference(x2, module2.w_conv, module2.b_conv, stride2)
    assert out2.shape == (B2, module2.num_patches, embed_dim), out2.shape
    assert jnp.allclose(out2, ref2, atol=2e-2, rtol=2e-2), "mismatch (overlap)"

    print("KERNEL_OK")
</pallas_src>

<mosaic_0001>
module attributes {stable_mosaic.version = 11 : i64} {
  func.func @_patch_embed_kernel(%arg0: i32, %arg1: memref<32x128xbf16, #tpu.memory_space<vmem>>, %arg2: memref<128x128xbf16, #tpu.memory_space<vmem>>, %arg3: memref<1x128xf32, #tpu.memory_space<vmem>>, %arg4: memref<32x128xf32, #tpu.memory_space<vmem>>) attributes {dimension_semantics = [#tpu.dimension_semantics<parallel>], iteration_bounds = array<i64: 1>, scalar_prefetch = 0 : i64, scratch_operands = 0 : i64, tpu.core_type = #tpu.core_type<tc>, window_params = [{transform_indices = @transform_0, window_bounds = array<i64: 32, 128>}, {pipeline_mode = #tpu.pipeline_mode<synchronous>, transform_indices = @transform_1, window_bounds = array<i64: 128, 128>}, {pipeline_mode = #tpu.pipeline_mode<synchronous>, transform_indices = @transform_2, window_bounds = array<i64: 1, 128>}, {transform_indices = @transform_3, window_bounds = array<i64: 32, 128>}]} {
    %c0 = arith.constant 0 : index
    %c0_0 = arith.constant 0 : index
    %0 = vector.load %arg1[%c0, %c0_0] : memref<32x128xbf16, #tpu.memory_space<vmem>>, vector<32x128xbf16>
    %c0_1 = arith.constant 0 : index
    %c0_2 = arith.constant 0 : index
    %1 = vector.load %arg2[%c0_1, %c0_2] : memref<128x128xbf16, #tpu.memory_space<vmem>>, vector<128x128xbf16>
    %cst = arith.constant dense<0.000000e+00> : vector<32x128xf32>
    %2 = tpu.matmul %0, %1, %cst {dimension_numbers = #tpu.dot_dimension_numbers<[1], [0], [0], [1], [0, 0, 1, 1], [], []>} : vector<32x128xbf16>, vector<128x128xbf16>, vector<32x128xf32> -> vector<32x128xf32>
    %c0_3 = arith.constant 0 : index
    %c0_4 = arith.constant 0 : index
    %3 = vector.load %arg3[%c0_3, %c0_4] : memref<1x128xf32, #tpu.memory_space<vmem>>, vector<1x128xf32>
    %4 = vector.broadcast %3 : vector<1x128xf32> to vector<32x128xf32>
    %5 = arith.addf %2, %4 : vector<32x128xf32>
    %c0_5 = arith.constant 0 : index
    %c0_6 = arith.constant 0 : index
    %6 = vector.load %arg4[%c0_5, %c0_6] : memref<32x128xf32, #tpu.memory_space<vmem>>, vector<32x128xf32>
    tpu.vector_store %arg4[%c0_5, %c0_6], %5 {strides = array<i32>} : memref<32x128xf32, #tpu.memory_space<vmem>>, vector<32x128xf32>,
    return
  }
  func.func @transform_0(%arg0: i32) -> (i32, i32) {
    %c0_i32 = arith.constant 0 : i32
    %c0_i32_0 = arith.constant 0 : i32
    return %arg0, %c0_i32 : i32, i32
  }
  func.func @transform_1(%arg0: i32) -> (i32, i32) {
    %c0_i32 = arith.constant 0 : i32
    %c0_i32_0 = arith.constant 0 : i32
    %c0_i32_1 = arith.constant 0 : i32
    return %c0_i32, %c0_i32_0 : i32, i32
  }
  func.func @transform_2(%arg0: i32) -> (i32, i32) {
    %c0_i32 = arith.constant 0 : i32
    %c0_i32_0 = arith.constant 0 : i32
    %c0_i32_1 = arith.constant 0 : i32
    return %c0_i32, %c0_i32_0 : i32, i32
  }
  func.func @transform_3(%arg0: i32) -> (i32, i32) {
    %c0_i32 = arith.constant 0 : i32
    %c0_i32_0 = arith.constant 0 : i32
    return %arg0, %c0_i32 : i32, i32
  }
}

</mosaic_0001>

<bundles_post_ra>
// kernel: a_call__.1
= control target key start
LH: loop header
LB: loop body
LE: loop exit
PB: predicated region body
PF: predicated region fallthrough
CT: control target
= control target key end

     0   :  { %s287_s0 = inlined_call_operand.vmem [shape: bf16[32,128], index: 0, kind: input, shape index: {}]   ;;  %s288_s1 = inlined_call_operand.vmem [shape: bf16[128,128], index: 1, kind: input, shape index: {}]   ;;  %s289_s2 = inlined_call_operand.vmem [shape: f32[1,128], index: 2, kind: input, shape index: {}]   ;;  %s290_s3 = inlined_call_operand.hbm [shape: f32[32,128], index: 3, kind: output, shape index: {}]  }
   0x1   :  { %v189_v0 = vld [vmem:[%s288_s1 + $0x38] sm:$0xff]  ;;  %v188_v1 = vld [vmem:[%s288_s1 + $0x30] sm:$0xff] }
   0x2   :  { %99 = vmatpush.bf16.msra.mxu0 %v189_v0  ;;  %190 = vmatpush.bf16.msra.mxu1 %v189_v0 }
   0x3   :  { %8 = vsyncpa [#allocation3], 0  ;;  %v187_v2 = vld [vmem:[%s288_s1 + $0x28] sm:$0xff]  ;;  %v186_v3 = vld [vmem:[%s288_s1 + $0x20] sm:$0xff]  ;;  %s230_s10 = smov 8  }
   0x4   :  { %v185_v4 = vld [vmem:[%s288_s1 + $0x18] sm:$0xff]  ;;  %v184_v5 = vld [vmem:[%s288_s1 + $0x10] sm:$0xff]  ;;  %v183_v6 = vld [vmem:[%s288_s1 + $0x8] sm:$0xff] }
   0x5   :  { %v182_v7 = vld [vmem:[%s288_s1] sm:$0xff]  ;;  %v181_v9 = vld [vmem:[%s287_s0 + $0x8] sm:$0xff]  ;;  %s228_s1 = smov [#allocation2]  }
   0x6   :  { %100 = vmatpush.bf16.msra.mxu0 %v188_v1  ;;  %191 = vmatpush.bf16.msra.mxu1 %v188_v1  ;;  %v180_v8 = vld [vmem:[%s287_s0] sm:$0xff]  ;;  %s126_s7 = sshll.u32 %s228_s1, 4  ;;  %s128_s0 = sshll.u32 %s290_s3, 4  ;;  %s127_s7 = int_to_ptr.vmem [resolvable:$true] %s126_s7  ;;  %s129_s0 = int_to_ptr.hbm [resolvable:$true] %s128_s0 }
   0x7   :  { %v201_v10 = vld [vmem:[%s289_s2] ss:$0 sm:$0xff]  ;;  %s229_s2 = smov 128  }
   0xa   :  { %101 = vmatpush.bf16.msra.mxu0 %v187_v2  ;;  %192 = vmatpush.bf16.msra.mxu1 %v187_v2 }
   0xe   :  { %102 = vmatpush.bf16.msra.mxu0 %v186_v3  ;;  %193 = vmatpush.bf16.msra.mxu1 %v186_v3 }
  0x12   :  { %103 = vmatpush.bf16.msra.mxu0 %v185_v4  ;;  %194 = vmatpush.bf16.msra.mxu1 %v185_v4 }
  0x16   :  { %104 = vmatpush.bf16.msra.mxu0 %v184_v5  ;;  %195 = vmatpush.bf16.msra.mxu1 %v184_v5 }
  0x1a   :  { %105 = vmatpush.bf16.msra.mxu0 %v183_v6  ;;  %196 = vmatpush.bf16.msra.mxu1 %v183_v6 }
  0x1e   :  { %106 = vmatpush.bf16.msra.mxu0 %v182_v7  ;;  %197 = vmatpush.bf16.msra.mxu1 %v182_v7 }
  0x21   :  { %107 = vmatmul.bf16.vlgmr.msra.gmra.mxu0 %v180_v8  ;;  %112 = vmatmul.bf16.vlgmr.msra.gmra.mxu1 %v181_v9 }
  0x9e   :  { %v108_v11 = vpop.f32.mrf.mxu0  ;;  %v113_v12 = vpop.f32.mrf.mxu1 }
  0x9f   :  { %v109_v13 = vadd.f32 %v201_v10, %v108_v11  ;;  %v114_v14 = vadd.f32 %v201_v10, %v113_v12 }
  0xa1   :  { %118 = vst [vmem:[#allocation2] sm:$0xff] %v109_v13 }
  0xa2   :  { %120 = vst [vmem:[#allocation2 + $0x10] sm:$0xff] %v114_v14 }
  0xa6   :  { %v110_v15 = vpop.f32.mrf.mxu0  ;;  %v115_v16 = vpop.f32.mrf.mxu1 }
  0xa7   :  { %v111_v17 = vadd.f32 %v201_v10, %v110_v15  ;;  %v116_v18 = vadd.f32 %v201_v10, %v115_v16 }
  0xa9   :  { %119 = vst [vmem:[#allocation2 + $0x8] sm:$0xff] %v111_v17 }
  0xaa   :  { %121 = vst [vmem:[#allocation2 + $0x18] sm:$0xff] %v116_v18 }
  0xab   :  { %134 = dma.vmem_to_hbm [thread:$0]  %s127_s7, 512, %s129_s0, [#allocation3], %s229_s2, %s229_s2, %s230_s10  }
  0xac   :  { %226 = dma.done.wait [#allocation3], 512  }
  0xad   :  { %227 = vsyncadd [#allocation3], 4294966784 }
  0xae   :  { %139 = vsyncpa [#allocation3], 1 }

</bundles_post_ra>
